<compile_context>
chip_gen: v6e
topology: v6e:2x2x1
jax: 0.10.0
libtpu: 0.0.40
codegen_flags: <defaults>
</compile_context>

<pallas_src>
import math
import functools

import jax
import jax.numpy as jnp
from jax.experimental import pallas as pl
from jax.experimental.pallas import tpu as pltpu

LANE = 128
SUBLANE = 8
MAX_TILE_B = 2048  # per-tile VMEM at 2048 rows is only a few MB -> far below scoped VMEM.


def _cdiv(a, b):
    return -(-a // b)


def _round_up(n, m):
    return _cdiv(n, m) * m


def _pad2d(x, rows, cols):
    r, c = x.shape
    return jnp.pad(x, ((0, rows - r), (0, cols - c)))


# --------------------------------------------------------------------------------------
# Kernel
# --------------------------------------------------------------------------------------
def dqn_kernel(x_ref, w1_ref, b1_ref, w2_ref, b2_ref, w3_ref, b3_ref, o_ref):
    cdt = w1_ref.dtype  # matmul operand dtype (f32 or bf16); accumulation is always f32.

    # fc1 + ReLU (bias add / ReLU in f32). x arrives already cast to the compute dtype.
    h1 = jnp.dot(x_ref[...], w1_ref[...], preferred_element_type=jnp.float32) + b1_ref[...]
    h1 = jnp.maximum(h1, 0.0)
    # fc2 + ReLU
    h2 = jnp.dot(h1.astype(cdt), w2_ref[...], preferred_element_type=jnp.float32) + b2_ref[...]
    h2 = jnp.maximum(h2, 0.0)
    # fc3 (no activation); output is the true action_size wide (no lane padding).
    o_ref[...] = (
        jnp.dot(h2.astype(cdt), w3_ref[...], preferred_element_type=jnp.float32) + b3_ref[...]
    ).astype(o_ref.dtype)


# --------------------------------------------------------------------------------------
# Parameter preparation (done ONCE, at init / after each param update)
# --------------------------------------------------------------------------------------
def prepare_dqn_params(params, compute_dtype=jnp.bfloat16):
    """Pad hidden feature dims to 128 lanes, keep the output dim at the true action_size,
    and cast weights to the compute dtype. Returns a dict containing ONLY device arrays
    (all shape metadata is recovered statically from array shapes inside dqn_forward)."""
    w1, b1 = params["w1"], params["b1"]
    w2, b2 = params["w2"], params["b2"]
    w3, b3 = params["w3"], params["b3"]

    state_size, hidden = w1.shape
    Hp = _round_up(hidden, LANE)

    return {
        # Weights: (in, out). w1's 'in' dim stays at the true state_size and w3's 'out'
        # dim stays at the true action_size (block dim == full array dim is legal; Mosaic
        # pads in-vreg). Hidden dims are padded to 128 lanes with exact zeros.
        "w1": _pad2d(w1, state_size, Hp).astype(compute_dtype),
        "w2": _pad2d(w2, Hp, Hp).astype(compute_dtype),
        "w3": _pad2d(w3, Hp, w3.shape[1]).astype(compute_dtype),
        # Biases stay f32 (bias add / ReLU run in f32 inside the kernel).
        "b1": _pad2d(b1.reshape(1, -1).astype(jnp.float32), 1, Hp),
        "b2": _pad2d(b2.reshape(1, -1).astype(jnp.float32), 1, Hp),
        "b3": b3.reshape(1, -1).astype(jnp.float32),
    }


# --------------------------------------------------------------------------------------
# Forward pass
# --------------------------------------------------------------------------------------
@functools.partial(jax.jit, static_argnames=("interpret",))
def dqn_forward(x, prepared, *, interpret=False):
    """x: (B, state_size). prepared: output of prepare_dqn_params. Returns (B, action_size) f32."""
    w1, b1 = prepared["w1"], prepared["b1"]
    w2, b2 = prepared["w2"], prepared["b2"]
    w3, b3 = prepared["w3"], prepared["b3"]

    # All static Python ints (array shapes are static under jit).
    S, Hp = w1.shape
    A = w3.shape[1]
    B = x.shape[0]

    # --- batch tiling ---------------------------------------------------------------
    Bp8 = _round_up(B, SUBLANE)
    if Bp8 <= MAX_TILE_B:
        if Bp8 >= 64:
            # Two parallel tiles so v7x megacore has work for both TensorCores
            # (negligible extra grid overhead on v5e/v6e).
            num_tiles = 2
            tile_b = _round_up(_cdiv(Bp8, 2), SUBLANE)
        else:
            num_tiles = 1
            tile_b = Bp8
    else:
        # Tight granule: pad only up to the per-tile sublane multiple, not to MAX_TILE_B.
        num_tiles = _cdiv(B, MAX_TILE_B)
        tile_b = _round_up(_cdiv(B, num_tiles), SUBLANE)
    Bp = tile_b * num_tiles

    # Pre-cast x to the compute dtype once (bf16 path halves activation DMA and removes
    # in-kernel operand casts); batch-only pad, feature dim stays at the true state size.
    x = x.astype(w1.dtype)
    if Bp != B:
        x = jnp.pad(x, ((0, Bp - B), (0, 0)))

    # Constant index_map => weights/biases stay resident in VMEM across batch tiles.
    const2 = lambda shape: pl.BlockSpec(shape, lambda i: (0, 0))

    wbytes = sum(int(a.size) * a.dtype.itemsize for a in (w1, w2, w3, b1, b2, b3))
    cost = pl.CostEstimate(
        flops=int(2 * Bp * (S * Hp + Hp * Hp + Hp * A)),
        transcendentals=0,
        bytes_accessed=int(x.size * x.dtype.itemsize) + int(wbytes) + int(Bp * A * 4),
    )

    out_p = pl.pallas_call(
        dqn_kernel,
        out_shape=jax.ShapeDtypeStruct((Bp, A), jnp.float32),
        grid_spec=pltpu.PrefetchScalarGridSpec(
            num_scalar_prefetch=0,
            grid=(num_tiles,),
            in_specs=[
                pl.BlockSpec((tile_b, S), lambda i: (i, 0)),   # x: tiled over batch
                const2((S, Hp)), const2((1, Hp)),              # fc1
                const2((Hp, Hp)), const2((1, Hp)),             # fc2
                const2((Hp, A)), const2((1, A)),               # fc3 (true action_size out)
            ],
            out_specs=pl.BlockSpec((tile_b, A), lambda i: (i, 0)),
        ),
        compiler_params=pltpu.CompilerParams(
            dimension_semantics=("parallel",),  # batch tiles are independent (v7x megacore)
        ),
        cost_estimate=cost,
        interpret=interpret,
    )(x, w1, b1, w2, b2, w3, b3)

    return out_p if Bp == B else out_p[:B]


# --------------------------------------------------------------------------------------
# Init + reference
# --------------------------------------------------------------------------------------
def init_dqn_params(key, state_size, action_size, hidden=24):
    """PyTorch nn.Linear default init: U(-1/sqrt(fan_in), 1/sqrt(fan_in))."""
    ks = jax.random.split(key, 6)

    def linear(kw, kb, fan_in, fan_out):
        bound = 1.0 / math.sqrt(fan_in)
        w = jax.random.uniform(kw, (fan_in, fan_out), jnp.float32, -bound, bound)
        b = jax.random.uniform(kb, (fan_out,), jnp.float32, -bound, bound)
        return w, b

    w1, b1 = linear(ks[0], ks[1], state_size, hidden)
    w2, b2 = linear(ks[2], ks[3], hidden, hidden)
    w3, b3 = linear(ks[4], ks[5], hidden, action_size)
    return {"w1": w1, "b1": b1, "w2": w2, "b2": b2, "w3": w3, "b3": b3}


def dqn_reference(x, p):
    h1 = jnp.maximum(x @ p["w1"] + p["b1"], 0.0)
    h2 = jnp.maximum(h1 @ p["w2"] + p["b2"], 0.0)
    return h2 @ p["w3"] + p["b3"]


# --------------------------------------------------------------------------------------
# Demo / correctness check
# --------------------------------------------------------------------------------------
if __name__ == "__main__":
    key = jax.random.PRNGKey(0)
    k_param, k_x1, k_x2 = jax.random.split(key, 3)

    state_size = 16   # env.observation_space.shape[0]
    action_size = 4   # env.action_space.n

    params = init_dqn_params(k_param, state_size, action_size, hidden=24)

    # --- small inference-style batch, f32 compute, single tile, tight tolerance ---
    prepared_f32 = prepare_dqn_params(params, compute_dtype=jnp.float32)
    x_small = jax.random.normal(k_x1, (2, state_size), jnp.float32)
    out_small = dqn_forward(x_small, prepared_f32)
    jax.block_until_ready(out_small)
    ref_small = dqn_reference(x_small, params)
    assert out_small.shape == (2, action_size)
    assert jnp.allclose(out_small, ref_small, atol=1e-5, rtol=1e-5), "f32 mismatch vs reference"

    # --- larger, ragged replay-buffer batch, bf16 operands, 2-tile parallel grid ---
    prepared_bf16 = prepare_dqn_params(params, compute_dtype=jnp.bfloat16)
    x_big = jax.random.normal(k_x2, (1037, state_size), jnp.float32)
    out_big = dqn_forward(x_big, prepared_bf16)
    jax.block_until_ready(out_big)
    ref_big = dqn_reference(x_big, params)
    assert out_big.shape == (1037, action_size)
    assert jnp.allclose(out_big, ref_big, atol=6e-2, rtol=6e-2), "bf16 mismatch vs reference"

    print("KERNEL_OK")
</pallas_src>

<mosaic_0001>
module attributes {stable_mosaic.version = 11 : i64} {
  func.func @dqn_kernel(%arg0: i32, %arg1: memref<8x16xf32, #tpu.memory_space<vmem>>, %arg2: memref<16x128xf32, #tpu.memory_space<vmem>>, %arg3: memref<1x128xf32, #tpu.memory_space<vmem>>, %arg4: memref<128x128xf32, #tpu.memory_space<vmem>>, %arg5: memref<1x128xf32, #tpu.memory_space<vmem>>, %arg6: memref<128x4xf32, #tpu.memory_space<vmem>>, %arg7: memref<1x4xf32, #tpu.memory_space<vmem>>, %arg8: memref<8x4xf32, #tpu.memory_space<vmem>>) attributes {dimension_semantics = [#tpu.dimension_semantics<parallel>], iteration_bounds = array<i64: 1>, scalar_prefetch = 0 : i64, scratch_operands = 0 : i64, tpu.core_type = #tpu.core_type<tc>, window_params = [{transform_indices = @transform_0, window_bounds = array<i64: 8, 16>}, {pipeline_mode = #tpu.pipeline_mode<synchronous>, transform_indices = @transform_1, window_bounds = array<i64: 16, 128>}, {pipeline_mode = #tpu.pipeline_mode<synchronous>, transform_indices = @transform_2, window_bounds = array<i64: 1, 128>}, {pipeline_mode = #tpu.pipeline_mode<synchronous>, transform_indices = @transform_3, window_bounds = array<i64: 128, 128>}, {pipeline_mode = #tpu.pipeline_mode<synchronous>, transform_indices = @transform_4, window_bounds = array<i64: 1, 128>}, {pipeline_mode = #tpu.pipeline_mode<synchronous>, transform_indices = @transform_5, window_bounds = array<i64: 128, 4>}, {pipeline_mode = #tpu.pipeline_mode<synchronous>, transform_indices = @transform_6, window_bounds = array<i64: 1, 4>}, {transform_indices = @transform_7, window_bounds = array<i64: 8, 4>}]} {
    %c0 = arith.constant 0 : index
    %c0_0 = arith.constant 0 : index
    %0 = vector.load %arg1[%c0, %c0_0] : memref<8x16xf32, #tpu.memory_space<vmem>>, vector<8x16xf32>
    %c0_1 = arith.constant 0 : index
    %c0_2 = arith.constant 0 : index
    %1 = vector.load %arg2[%c0_1, %c0_2] : memref<16x128xf32, #tpu.memory_space<vmem>>, vector<16x128xf32>
    %cst = arith.constant dense<0.000000e+00> : vector<8x128xf32>
    %2 = tpu.matmul %0, %1, %cst {dimension_numbers = #tpu.dot_dimension_numbers<[1], [0], [0], [1], [0, 0, 1, 1], [], []>} : vector<8x16xf32>, vector<16x128xf32>, vector<8x128xf32> -> vector<8x128xf32>
    %c0_3 = arith.constant 0 : index
    %c0_4 = arith.constant 0 : index
    %3 = vector.load %arg3[%c0_3, %c0_4] : memref<1x128xf32, #tpu.memory_space<vmem>>, vector<1x128xf32>
    %4 = vector.broadcast %3 : vector<1x128xf32> to vector<8x128xf32>
    %5 = arith.addf %2, %4 : vector<8x128xf32>
    %cst_5 = arith.constant 0.000000e+00 : f32
    %6 = vector.broadcast %cst_5 : f32 to vector<8x128xf32>
    %7 = arith.maximumf %5, %6 : vector<8x128xf32>
    %c0_6 = arith.constant 0 : index
    %c0_7 = arith.constant 0 : index
    %8 = vector.load %arg4[%c0_6, %c0_7] : memref<128x128xf32, #tpu.memory_space<vmem>>, vector<128x128xf32>
    %cst_8 = arith.constant dense<0.000000e+00> : vector<8x128xf32>
    %9 = tpu.matmul %7, %8, %cst_8 {dimension_numbers = #tpu.dot_dimension_numbers<[1], [0], [0], [1], [0, 0, 1, 1], [], []>} : vector<8x128xf32>, vector<128x128xf32>, vector<8x128xf32> -> vector<8x128xf32>
    %c0_9 = arith.constant 0 : index
    %c0_10 = arith.constant 0 : index
    %10 = vector.load %arg5[%c0_9, %c0_10] : memref<1x128xf32, #tpu.memory_space<vmem>>, vector<1x128xf32>
    %11 = vector.broadcast %10 : vector<1x128xf32> to vector<8x128xf32>
    %12 = arith.addf %9, %11 : vector<8x128xf32>
    %cst_11 = arith.constant 0.000000e+00 : f32
    %13 = vector.broadcast %cst_11 : f32 to vector<8x128xf32>
    %14 = arith.maximumf %12, %13 : vector<8x128xf32>
    %c0_12 = arith.constant 0 : index
    %c0_13 = arith.constant 0 : index
    %15 = vector.load %arg6[%c0_12, %c0_13] : memref<128x4xf32, #tpu.memory_space<vmem>>, vector<128x4xf32>
    %cst_14 = arith.constant dense<0.000000e+00> : vector<8x4xf32>
    %16 = tpu.matmul %14, %15, %cst_14 {dimension_numbers = #tpu.dot_dimension_numbers<[1], [0], [0], [1], [0, 0, 1, 1], [], []>} : vector<8x128xf32>, vector<128x4xf32>, vector<8x4xf32> -> vector<8x4xf32>
    %c0_15 = arith.constant 0 : index
    %c0_16 = arith.constant 0 : index
    %17 = vector.load %arg7[%c0_15, %c0_16] : memref<1x4xf32, #tpu.memory_space<vmem>>, vector<1x4xf32>
    %18 = vector.broadcast %17 : vector<1x4xf32> to vector<8x4xf32>
    %19 = arith.addf %16, %18 : vector<8x4xf32>
    %c0_17 = arith.constant 0 : index
    %c0_18 = arith.constant 0 : index
    %20 = vector.load %arg8[%c0_17, %c0_18] : memref<8x4xf32, #tpu.memory_space<vmem>>, vector<8x4xf32>
    tpu.vector_store %arg8[%c0_17, %c0_18], %19 {strides = array<i32>} : memref<8x4xf32, #tpu.memory_space<vmem>>, vector<8x4xf32>,
    return
  }
  func.func @transform_0(%arg0: i32) -> (i32, i32) {
    %c0_i32 = arith.constant 0 : i32
    %c0_i32_0 = arith.constant 0 : i32
    return %arg0, %c0_i32 : i32, i32
  }
  func.func @transform_1(%arg0: i32) -> (i32, i32) {
    %c0_i32 = arith.constant 0 : i32
    %c0_i32_0 = arith.constant 0 : i32
    %c0_i32_1 = arith.constant 0 : i32
    return %c0_i32, %c0_i32_0 : i32, i32
  }
  func.func @transform_2(%arg0: i32) -> (i32, i32) {
    %c0_i32 = arith.constant 0 : i32
    %c0_i32_0 = arith.constant 0 : i32
    %c0_i32_1 = arith.constant 0 : i32
    return %c0_i32, %c0_i32_0 : i32, i32
  }
  func.func @transform_3(%arg0: i32) -> (i32, i32) {
    %c0_i32 = arith.constant 0 : i32
    %c0_i32_0 = arith.constant 0 : i32
    %c0_i32_1 = arith.constant 0 : i32
    return %c0_i32, %c0_i32_0 : i32, i32
  }
  func.func @transform_4(%arg0: i32) -> (i32, i32) {
    %c0_i32 = arith.constant 0 : i32
    %c0_i32_0 = arith.constant 0 : i32
    %c0_i32_1 = arith.constant 0 : i32
    return %c0_i32, %c0_i32_0 : i32, i32
  }
  func.func @transform_5(%arg0: i32) -> (i32, i32) {
    %c0_i32 = arith.constant 0 : i32
    %c0_i32_0 = arith.constant 0 : i32
    %c0_i32_1 = arith.constant 0 : i32
    return %c0_i32, %c0_i32_0 : i32, i32
  }
  func.func @transform_6(%arg0: i32) -> (i32, i32) {
    %c0_i32 = arith.constant 0 : i32
    %c0_i32_0 = arith.constant 0 : i32
    %c0_i32_1 = arith.constant 0 : i32
    return %c0_i32, %c0_i32_0 : i32, i32
  }
  func.func @transform_7(%arg0: i32) -> (i32, i32) {
    %c0_i32 = arith.constant 0 : i32
    %c0_i32_0 = arith.constant 0 : i32
    return %arg0, %c0_i32 : i32, i32
  }
}

</mosaic_0001>

<bundles_post_ra>
// kernel: dqn_forward.1
= control target key start
LH: loop header
LB: loop body
LE: loop exit
PB: predicated region body
PF: predicated region fallthrough
CT: control target
= control target key end

     0   :  { %v424_v0 = vmov 0.0   ;;  %vm425_vm0 = vmmov 0   ;;  %vm36_vm1 = vcmask 130048   ;;  %vm298_vm2 = vcmask 31744   ;;  %s623_s1 = inlined_call_operand.vmem [shape: f32[16,128], index: 1, kind: input, shape index: {}]   ;;  %s624_s0 = inlined_call_operand.vmem [shape: f32[8,16], index: 0, kind: input, shape index: {}]   ;;  %s625_s3 = inlined_call_operand.vmem [shape: f32[128,128], index: 3, kind: input, shape index: {}]   ;;  %s626_s5 = inlined_call_operand.vmem [shape: f32[128,4], index: 5, kind: input, shape index: {}]   ;;  %s627_s2 = inlined_call_operand.vmem [shape: f32[1,128], index: 2, kind: input, shape index: {}]   ;;  %s628_s4 = inlined_call_operand.vmem [shape: f32[1,128], index: 4, kind: input, shape index: {}]   ;;  %s629_s6 = inlined_call_operand.vmem [shape: f32[1,4], index: 6, kind: input, shape index: {}]   ;;  %s630_s7 = inlined_call_operand.vmem [shape: f32[8,4], index: 7, kind: output, shape index: {}]  }
   0x1   :  { %345 = vmatprep.subr.mxu0 %v424_v0  ;;  %v28_v1 = vld [vmem:[%s623_s1 + $0x8] sm:$0xff]  ;;  %v27_v2 = vld [vmem:[%s623_s1] sm:$0xff]  ;;  %349 = vmatprep.mubr.msk.f32.mxu0 %vm425_vm0, %v424_v0  ;;  %v126_v4 = vld [vmem:[%s625_s3 + $0x78] sm:$0xff] }
   0x2   :  { %346 = vmatpush3.msra.mxu0 %v28_v1  ;;  %v26_v3 = vld [vmem:[%s624_s0] sm:$0xff]  ;;  %352 = vmatprep.subr.mxu1 %v424_v0  ;;  %v125_v5 = vld [vmem:[%s625_s3 + $0x70] sm:$0xff]  ;;  %v124_v6 = vld [vmem:[%s625_s3 + $0x68] sm:$0xff] }
   0x3   :  { %347 = vmatprep.subr.mxu0 %v424_v0  ;;  %353 = vmatpush3.msra.mxu1 %v126_v4  ;;  %v123_v7 = vld [vmem:[%s625_s3 + $0x60] sm:$0xff]  ;;  %v122_v8 = vld [vmem:[%s625_s3 + $0x58] sm:$0xff]  ;;  %v121_v9 = vld [vmem:[%s625_s3 + $0x50] sm:$0xff] }
   0x4   :  { %348 = vmatpush3.msra.mxu0 %v27_v2  ;;  %354 = vmatprep.subr.mxu1 %v424_v0  ;;  %v120_v10 = vld [vmem:[%s625_s3 + $0x48] sm:$0xff]  ;;  %v119_v11 = vld [vmem:[%s625_s3 + $0x40] sm:$0xff]  ;;  %v118_v12 = vld [vmem:[%s625_s3 + $0x38] sm:$0xff] }
   0x5   :  { %350 = vmatmul.mubr.msk.f32.vlgmr.msra.gmra.mxu0 %vm36_vm1, %v26_v3  ;;  %355 = vmatpush3.msra.mxu1 %v125_v5  ;;  %v117_v13 = vld [vmem:[%s625_s3 + $0x30] sm:$0xff]  ;;  %v116_v14 = vld [vmem:[%s625_s3 + $0x28] sm:$0xff]  ;;  %v115_v15 = vld [vmem:[%s625_s3 + $0x20] sm:$0xff] }
   0x6   :  { %356 = vmatprep.subr.mxu1 %v424_v0  ;;  %384 = vmatprep.mubr.msk.f32.mxu1 %vm425_vm0, %v424_v0  ;;  %v114_v16 = vld [vmem:[%s625_s3 + $0x18] sm:$0xff]  ;;  %v113_v17 = vld [vmem:[%s625_s3 + $0x10] sm:$0xff]  ;;  %v112_v18 = vld [vmem:[%s625_s3 + $0x8] sm:$0xff] }
   0x7   :  { %357 = vmatpush3.msra.mxu1 %v124_v6  ;;  %387 = vmatprep.subr.mxu0 %v424_v0  ;;  %v111_v19 = vld [vmem:[%s625_s3] sm:$0xff]  ;;  %v220_v20 = vld [vmem:[%s626_s5 + $0x78] sm:$0xff]  ;;  %v219_v21 = vld [vmem:[%s626_s5 + $0x70] sm:$0xff] }
   0x8   :  { %358 = vmatprep.subr.mxu1 %v424_v0  ;;  %419 = vmatprep.mubr.msk.f32.mxu0 %vm425_vm0, %v424_v0  ;;  %v218_v22 = vld [vmem:[%s626_s5 + $0x68] sm:$0xff]  ;;  %v217_v23 = vld [vmem:[%s626_s5 + $0x60] sm:$0xff]  ;;  %v216_v24 = vld [vmem:[%s626_s5 + $0x58] sm:$0xff] }
   0x9   :  { %359 = vmatpush3.msra.mxu1 %v123_v7  ;;  %388 = vmatpush3.msra.mxu0 %v220_v20  ;;  %v215_v25 = vld [vmem:[%s626_s5 + $0x50] sm:$0xff]  ;;  %v214_v26 = vld [vmem:[%s626_s5 + $0x48] sm:$0xff]  ;;  %v213_v27 = vld [vmem:[%s626_s5 + $0x40] sm:$0xff] }
   0xa   :  { %360 = vmatprep.subr.mxu1 %v424_v0  ;;  %389 = vmatprep.subr.mxu0 %v424_v0  ;;  %v212_v28 = vld [vmem:[%s626_s5 + $0x38] sm:$0xff]  ;;  %v211_v29 = vld [vmem:[%s626_s5 + $0x30] sm:$0xff]  ;;  %v210_v30 = vld [vmem:[%s626_s5 + $0x28] sm:$0xff] }
   0xb   :  { %361 = vmatpush3.msra.mxu1 %v122_v8  ;;  %390 = vmatpush3.msra.mxu0 %v219_v21  ;;  %v209_v31 = vld [vmem:[%s626_s5 + $0x20] sm:$0xff]  ;;  %v208_v32 = vld [vmem:[%s626_s5 + $0x18] sm:$0xff]  ;;  %v207_v38 = vld [vmem:[%s626_s5 + $0x10] sm:$0xff] }
   0xc   :  { %362 = vmatprep.subr.mxu1 %v424_v0  ;;  %391 = vmatprep.subr.mxu0 %v424_v0  ;;  %v304_v33 = vld [vmem:[%s627_s2] ss:$0 sm:$0xff]  ;;  %v206_v39 = vld [vmem:[%s626_s5 + $0x8] sm:$0xff] }
   0xd   :  { %363 = vmatpush3.msra.mxu1 %v121_v9  ;;  %392 = vmatpush3.msra.mxu0 %v218_v22  ;;  %v205_v40 = vld [vmem:[%s626_s5] sm:$0xff] }
   0xe   :  { %364 = vmatprep.subr.mxu1 %v424_v0  ;;  %393 = vmatprep.subr.mxu0 %v424_v0  ;;  %v306_v41 = vld [vmem:[%s628_s4] ss:$0 sm:$0xff] }
   0xf   :  { %365 = vmatpush3.msra.mxu1 %v120_v10  ;;  %394 = vmatpush3.msra.mxu0 %v217_v23  ;;  %v307_v46 = vld [vmem:[%s629_s6] ss:$0 sm:$0xff] }
  0x10   :  { %366 = vmatprep.subr.mxu1 %v424_v0  ;;  %395 = vmatprep.subr.mxu0 %v424_v0 }
  0x11   :  { %367 = vmatpush3.msra.mxu1 %v119_v11  ;;  %396 = vmatpush3.msra.mxu0 %v216_v24 }
  0x12   :  { %368 = vmatprep.subr.mxu1 %v424_v0  ;;  %397 = vmatprep.subr.mxu0 %v424_v0 }
  0x13   :  { %369 = vmatpush3.msra.mxu1 %v118_v12  ;;  %398 = vmatpush3.msra.mxu0 %v215_v25 }
  0x14   :  { %370 = vmatprep.subr.mxu1 %v424_v0  ;;  %399 = vmatprep.subr.mxu0 %v424_v0 }
  0x15   :  { %371 = vmatpush3.msra.mxu1 %v117_v13  ;;  %400 = vmatpush3.msra.mxu0 %v214_v26 }
  0x16   :  { %372 = vmatprep.subr.mxu1 %v424_v0  ;;  %401 = vmatprep.subr.mxu0 %v424_v0 }
  0x17   :  { %373 = vmatpush3.msra.mxu1 %v116_v14  ;;  %402 = vmatpush3.msra.mxu0 %v213_v27 }
  0x18   :  { %374 = vmatprep.subr.mxu1 %v424_v0  ;;  %403 = vmatprep.subr.mxu0 %v424_v0 }
  0x19   :  { %375 = vmatpush3.msra.mxu1 %v115_v15  ;;  %404 = vmatpush3.msra.mxu0 %v212_v28 }
  0x1a   :  { %376 = vmatprep.subr.mxu1 %v424_v0  ;;  %405 = vmatprep.subr.mxu0 %v424_v0 }
  0x1b   :  { %377 = vmatpush3.msra.mxu1 %v114_v16  ;;  %406 = vmatpush3.msra.mxu0 %v211_v29 }
  0x1c   :  { %378 = vmatprep.subr.mxu1 %v424_v0  ;;  %407 = vmatprep.subr.mxu0 %v424_v0 }
  0x1d   :  { %379 = vmatpush3.msra.mxu1 %v113_v17  ;;  %408 = vmatpush3.msra.mxu0 %v210_v30 }
  0x1e   :  { %380 = vmatprep.subr.mxu1 %v424_v0  ;;  %409 = vmatprep.subr.mxu0 %v424_v0 }
  0x1f   :  { %381 = vmatpush3.msra.mxu1 %v112_v18  ;;  %410 = vmatpush3.msra.mxu0 %v209_v31 }
  0x20   :  { %382 = vmatprep.subr.mxu1 %v424_v0  ;;  %411 = vmatprep.subr.mxu0 %v424_v0 }
  0x21   :  { %383 = vmatpush3.msra.mxu1 %v111_v19  ;;  %412 = vmatpush3.msra.mxu0 %v208_v32 }
  0x22   :  { %413 = vmatprep.subr.mxu0 %v424_v0 }
  0x23   :  { %414 = vmatpush3.msra.mxu0 %v207_v38 }
  0x24   :  { %415 = vmatprep.subr.mxu0 %v424_v0 }
  0x25   :  { %416 = vmatpush3.msra.mxu0 %v206_v39 }
  0x26   :  { %417 = vmatprep.subr.mxu0 %v424_v0 }
  0x27   :  { %418 = vmatpush3.msra.mxu0 %v205_v40 }
  0xc5   :  { %v106_v34 = vpop.f32.mrf.mxu0 }
  0xc6   :  { %v107_v35 = vadd.f32 %v304_v33, %v106_v34 }
  0xc7   :  { %v351_v36 = vpop.f32.mrf.mxu0 }
  0xc8   :  { %v110_v37 = vmax.f32 %v107_v35, 0.0 }
  0xca   :  { %385 = vmatmul.mubr.f32.vlgmr.msra.gmra.mxu1 %v110_v37 }
 0x18a   :  { %v200_v42 = vpop.f32.mrf.mxu1 }
 0x18b   :  { %v201_v43 = vadd.f32 %v306_v41, %v200_v42 }
 0x18c   :  { %v386_v44 = vpop.f32.mrf.mxu1 }
 0x18d   :  { %v204_v45 = vmax.f32 %v201_v43, 0.0 }
 0x18f   :  { %420 = vmatmul.mubr.f32.vlgmr.msra.gmra.mxu0 %v204_v45 }
 0x24f   :  { %v294_v47 = vpop.f32.mrf.mxu0 }
 0x250   :  { %v295_v48 = vadd.f32 %v307_v46, %v294_v47 }
 0x251   :  { %v421_v49 = vpop.f32.mrf.mxu0 }
 0x252   :  { %299 = vst.msk [vmem:[%s630_s7] sm:$0xff] %vm298_vm2, %v295_v48 }

</bundles_post_ra>
